<compile_context>
chip_gen: v7x
topology: tpu7x:2x2x1
jax: 0.10.0
libtpu: 0.0.40
codegen_flags: <defaults>
</compile_context>

<pallas_src>
import jax
import jax.numpy as jnp
from jax import lax
from jax.experimental import pallas as pl
from jax.experimental.pallas import tpu as pltpu

LN_EPS = 1e-5  # PyTorch nn.LayerNorm default


# ------------------------------ kernel ----------------------------------
def _make_kernel(*, TL, L, has_proj):
    def _body(x_ref, w1_ref, b1_ref, g_ref, bt_ref, w2_ref, b2_ref,
              wres_ref, bres_ref, out_ref):
        t = pl.program_id(1)
        x = x_ref[0, 0]                               # (TL+8, C_in), bf16
        # buffer row j  <->  sequence index t*TL - 2 + j   (zeros outside [0, L))

        # ---- conv1 (k=3, pad=1) on TL+2 "extended" rows (1-row halo each
        # ---- side), fused as ONE im2col matmul on the MXU ----
        xcat = jnp.concatenate([x[0:TL + 2], x[1:TL + 3], x[2:TL + 4]], axis=-1)
        h = jnp.dot(xcat, w1_ref[...],
                    preferred_element_type=jnp.float32) + b1_ref[...]  # (TL+2, C_out) f32

        # ---- LayerNorm over channels + ReLU (f32) ----
        mean = jnp.mean(h, axis=-1, keepdims=True)
        var = jnp.mean(jnp.square(h - mean), axis=-1, keepdims=True)
        hn = (h - mean) * lax.rsqrt(var + LN_EPS) * g_ref[...] + bt_ref[...]
        hn = jnp.maximum(hn, 0.0)

        # Halo rows outside the sequence must be exactly zero so conv2 sees
        # its zero padding (bias/LN/ReLU would otherwise make them non-zero).
        seq_idx = t * TL - 1 + lax.broadcasted_iota(jnp.int32, (TL + 2, 1), 0)
        hn = jnp.where((seq_idx >= 0) & (seq_idx < L), hn, 0.0)
        hn_b = hn.astype(jnp.bfloat16)

        # ---- conv2 (k=3, pad=1), fused im2col matmul (no hpad scratch) ----
        hcat = jnp.concatenate([hn_b[0:TL], hn_b[1:TL + 1], hn_b[2:TL + 2]], axis=-1)
        y = jnp.dot(hcat, w2_ref[...],
                    preferred_element_type=jnp.float32) + b2_ref[...]  # (TL, C_out) f32

        # ---- residual branch ----
        xr = x[2:TL + 2]                              # rows t*TL .. t*TL+TL-1
        if has_proj:
            res = jnp.dot(xr, wres_ref[...],
                          preferred_element_type=jnp.float32) + bres_ref[...]
        else:
            res = xr.astype(jnp.float32)              # identity residual, no matmul

        # ---- add + ReLU; write channels-first so the store is lane-dense
        # ---- along L and no wrapper output transpose is needed ----
        out_ref[0] = jnp.maximum(y + res, 0.0).T.astype(out_ref.dtype)

    if has_proj:
        def kernel(x_ref, w1_ref, b1_ref, g_ref, bt_ref, w2_ref, b2_ref,
                   wres_ref, bres_ref, out_ref):
            _body(x_ref, w1_ref, b1_ref, g_ref, bt_ref, w2_ref, b2_ref,
                  wres_ref, bres_ref, out_ref)
    else:
        def kernel(x_ref, w1_ref, b1_ref, g_ref, bt_ref, w2_ref, b2_ref, out_ref):
            _body(x_ref, w1_ref, b1_ref, g_ref, bt_ref, w2_ref, b2_ref,
                  None, None, out_ref)
    return kernel


# ------------------------------ wrapper ---------------------------------
def _choose_tile_l(L):
    """Largest L-tile that keeps the output store lane-dense (TL % 128 == 0)
    and per-step VMEM bounded; fall back to the whole sequence."""
    if L <= 512 or L % 128 != 0:
        return L
    for tl in (512, 384, 256, 128):
        if L % tl == 0:
            return tl
    return L


def resblock1d_pallas(x, params, tile_l=None):
    """x: (N, C_in, L) float32, NCL like PyTorch. Returns (N, C_out, L) NCL."""
    N, C_in, L = x.shape
    C_out = params["b1"].shape[-1]
    has_proj = "wres" in params
    if not has_proj:
        assert C_in == C_out, "identity residual requires C_in == C_out"

    TL = _choose_tile_l(L) if tile_l is None else tile_l
    assert L % TL == 0 and (TL == L or TL % 128 == 0)
    nT = L // TL
    TLP = TL + 8  # 2-row halo each side + alignment padding (zeros)

    # NCL -> NLC (channels-last), zero pad along L, gather per-tile halo'd
    # windows; bf16 so tile HBM reads and MXU operands are half width.
    x_nlc = jnp.transpose(x, (0, 2, 1)).astype(jnp.bfloat16)      # (N, L, C_in)
    x_pad = jnp.pad(x_nlc, ((0, 0), (2, 6), (0, 0)))              # (N, L+8, C_in)
    idx = (jnp.arange(nT, dtype=jnp.int32) * TL)[:, None] \
        + jnp.arange(TLP, dtype=jnp.int32)[None, :]               # (nT, TLP)
    x_tiles = x_pad[:, idx, :]                                    # (N, nT, TLP, C_in)

    kernel = _make_kernel(TL=TL, L=L, has_proj=has_proj)

    xkw = {}
    if nT >= 4:
        xkw["pipeline_mode"] = pl.Buffered(3)   # hide per-tile DMA latency

    in_specs = [
        pl.BlockSpec((1, 1, TLP, C_in), lambda n, t: (n, t, 0, 0), **xkw),  # x tiles
        pl.BlockSpec((3 * C_in, C_out), lambda n, t: (0, 0)),    # w1 (resident)
        pl.BlockSpec((1, C_out), lambda n, t: (0, 0)),           # b1
        pl.BlockSpec((1, C_out), lambda n, t: (0, 0)),           # gamma
        pl.BlockSpec((1, C_out), lambda n, t: (0, 0)),           # beta
        pl.BlockSpec((3 * C_out, C_out), lambda n, t: (0, 0)),   # w2 (resident)
        pl.BlockSpec((1, C_out), lambda n, t: (0, 0)),           # b2
    ]
    args = [x_tiles, params["w1"], params["b1"], params["gamma"], params["beta"],
            params["w2"], params["b2"]]
    if has_proj:
        in_specs += [pl.BlockSpec((C_in, C_out), lambda n, t: (0, 0)),   # wres
                     pl.BlockSpec((1, C_out), lambda n, t: (0, 0))]      # bres
        args += [params["wres"], params["bres"]]

    out = pl.pallas_call(
        kernel,
        out_shape=jax.ShapeDtypeStruct((N, C_out, L), x.dtype),
        grid_spec=pltpu.PrefetchScalarGridSpec(
            num_scalar_prefetch=0,
            grid=(N, nT),
            in_specs=in_specs,
            out_specs=pl.BlockSpec((1, C_out, TL), lambda n, t: (n, 0, t)),
        ),
        compiler_params=pltpu.CompilerParams(
            dimension_semantics=("parallel", "parallel"),
            vmem_limit_bytes=32 * 1024 * 1024),
    )(*args)
    return out


# -------------------- deterministic parameter init ----------------------
def init_params(key, c_in, c_out):
    ks = jax.random.split(key, 8)
    # torch-layout conv weights: (C_out, C_in, K)
    w1_oik = 0.1 * jax.random.normal(ks[0], (c_out, c_in, 3), jnp.float32)
    b1 = 0.1 * jax.random.normal(ks[1], (c_out,), jnp.float32)
    w2_oik = 0.1 * jax.random.normal(ks[2], (c_out, c_out, 3), jnp.float32)
    b2 = 0.1 * jax.random.normal(ks[3], (c_out,), jnp.float32)
    gamma = 1.0 + 0.1 * jax.random.normal(ks[4], (c_out,), jnp.float32)
    beta = 0.1 * jax.random.normal(ks[5], (c_out,), jnp.float32)

    def to_kernel_w(w_oik):  # (C_out, C_in, K) -> (K*C_in, C_out) bf16, tap-major
        k_ci_co = jnp.transpose(w_oik, (2, 1, 0))
        return k_ci_co.reshape(-1, w_oik.shape[0]).astype(jnp.bfloat16)

    params = {
        "w1": to_kernel_w(w1_oik),
        "b1": b1.reshape(1, c_out),
        "gamma": gamma.reshape(1, c_out),
        "beta": beta.reshape(1, c_out),
        "w2": to_kernel_w(w2_oik),
        "b2": b2.reshape(1, c_out),
    }
    torch_layout = {"w1": w1_oik, "b1": b1, "w2": w2_oik, "b2": b2,
                    "gamma": gamma, "beta": beta, "wres": None, "bres": None}

    if c_in != c_out:
        wres_oik = 0.1 * jax.random.normal(ks[6], (c_out, c_in, 1), jnp.float32)
        bres = 0.1 * jax.random.normal(ks[7], (c_out,), jnp.float32)
        params["wres"] = jnp.transpose(wres_oik[:, :, 0], (1, 0)).astype(jnp.bfloat16)
        params["bres"] = bres.reshape(1, c_out)
        torch_layout["wres"] = wres_oik
        torch_layout["bres"] = bres
    return params, torch_layout


# ---------------- pure-JAX reference (mirrors PyTorch forward) ----------
def _conv1d_ref(x, w, b, pad):
    y = lax.conv_general_dilated(x, w, window_strides=(1,), padding=[(pad, pad)],
                                 dimension_numbers=("NCH", "OIH", "NCH"))
    return y + b[None, :, None]


def resblock1d_ref(x, tp):
    if tp["wres"] is not None:
        res = _conv1d_ref(x, tp["wres"], tp["bres"], pad=0)
    else:
        res = x
    h = _conv1d_ref(x, tp["w1"], tp["b1"], pad=1)
    h = jnp.transpose(h, (0, 2, 1))                      # (N, L, C_out)
    mean = jnp.mean(h, axis=-1, keepdims=True)
    var = jnp.mean(jnp.square(h - mean), axis=-1, keepdims=True)
    h = (h - mean) * lax.rsqrt(var + LN_EPS) * tp["gamma"] + tp["beta"]
    h = jnp.maximum(h, 0.0)
    h = jnp.transpose(h, (0, 2, 1))                      # (N, C_out, L)
    y = _conv1d_ref(h, tp["w2"], tp["b2"], pad=1)
    return jnp.maximum(y + res, 0.0)


if __name__ == "__main__":
    key = jax.random.PRNGKey(0)
    configs = [
        # (N, C_in, C_out, L, tile_l)
        (2, 4, 8, 16, None),     # 1x1 projection residual, single L tile
        (2, 8, 8, 16, None),     # identity residual (projection matmul skipped)
        (2, 4, 8, 256, 128),     # multi-tile along L (exercises halo handling)
    ]
    for i, (N, C_IN, C_OUT, L, TILE) in enumerate(configs):
        kx, kp = jax.random.split(jax.random.fold_in(key, i))
        x = jax.random.normal(kx, (N, C_IN, L), jnp.float32)
        params, torch_params = init_params(kp, C_IN, C_OUT)

        out = jax.block_until_ready(resblock1d_pallas(x, params, tile_l=TILE))
        ref = resblock1d_ref(x, torch_params)

        assert out.shape == (N, C_OUT, L)
        # bf16 MXU operands (f32 accumulation) -> slightly looser tolerance.
        assert jnp.allclose(out, ref, atol=5e-2, rtol=5e-2), f"mismatch in config {i}"

    print("KERNEL_OK")
</pallas_src>

<mosaic_0001>
module attributes {stable_mosaic.version = 11 : i64} {
  func.func @kernel(%arg0: i32, %arg1: i32, %arg2: memref<1x1x24x4xbf16, #tpu.memory_space<vmem>>, %arg3: memref<12x8xbf16, #tpu.memory_space<vmem>>, %arg4: memref<1x8xf32, #tpu.memory_space<vmem>>, %arg5: memref<1x8xf32, #tpu.memory_space<vmem>>, %arg6: memref<1x8xf32, #tpu.memory_space<vmem>>, %arg7: memref<24x8xbf16, #tpu.memory_space<vmem>>, %arg8: memref<1x8xf32, #tpu.memory_space<vmem>>, %arg9: memref<4x8xbf16, #tpu.memory_space<vmem>>, %arg10: memref<1x8xf32, #tpu.memory_space<vmem>>, %arg11: memref<1x8x16xf32, #tpu.memory_space<vmem>>) attributes {dimension_semantics = [#tpu.dimension_semantics<parallel>, #tpu.dimension_semantics<parallel>], iteration_bounds = array<i64: 2, 1>, scalar_prefetch = 0 : i64, scratch_operands = 0 : i64, tpu.core_type = #tpu.core_type<tc>, window_params = [{transform_indices = @transform_0, window_bounds = array<i64: 1, 1, 24, 4>}, {pipeline_mode = #tpu.pipeline_mode<synchronous>, transform_indices = @transform_1, window_bounds = array<i64: 12, 8>}, {pipeline_mode = #tpu.pipeline_mode<synchronous>, transform_indices = @transform_2, window_bounds = array<i64: 1, 8>}, {pipeline_mode = #tpu.pipeline_mode<synchronous>, transform_indices = @transform_3, window_bounds = array<i64: 1, 8>}, {pipeline_mode = #tpu.pipeline_mode<synchronous>, transform_indices = @transform_4, window_bounds = array<i64: 1, 8>}, {pipeline_mode = #tpu.pipeline_mode<synchronous>, transform_indices = @transform_5, window_bounds = array<i64: 24, 8>}, {pipeline_mode = #tpu.pipeline_mode<synchronous>, transform_indices = @transform_6, window_bounds = array<i64: 1, 8>}, {pipeline_mode = #tpu.pipeline_mode<synchronous>, transform_indices = @transform_7, window_bounds = array<i64: 4, 8>}, {pipeline_mode = #tpu.pipeline_mode<synchronous>, transform_indices = @transform_8, window_bounds = array<i64: 1, 8>}, {transform_indices = @transform_9, window_bounds = array<i64: 1, 8, 16>}]} {
    %c0 = arith.constant 0 : index
    %c0_0 = arith.constant 0 : index
    %c0_1 = arith.constant 0 : index
    %c0_2 = arith.constant 0 : index
    %0 = vector.load %arg2[%c0, %c0_0, %c0_1, %c0_2] : memref<1x1x24x4xbf16, #tpu.memory_space<vmem>>, vector<1x1x24x4xbf16>
    %1 = vector.shape_cast %0 : vector<1x1x24x4xbf16> to vector<24x4xbf16>
    %2 = vector.extract_strided_slice %1 {offsets = [0, 0], sizes = [18, 4], strides = [1, 1]} : vector<24x4xbf16> to vector<18x4xbf16>
    %3 = vector.extract_strided_slice %1 {offsets = [1, 0], sizes = [18, 4], strides = [1, 1]} : vector<24x4xbf16> to vector<18x4xbf16>
    %4 = vector.extract_strided_slice %1 {offsets = [2, 0], sizes = [18, 4], strides = [1, 1]} : vector<24x4xbf16> to vector<18x4xbf16>
    %5 = tpu.concatenate %2, %3, %4 in 1 : vector<18x4xbf16>, vector<18x4xbf16>, vector<18x4xbf16> -> vector<18x12xbf16>
    %c0_3 = arith.constant 0 : index
    %c0_4 = arith.constant 0 : index
    %6 = vector.load %arg3[%c0_3, %c0_4] : memref<12x8xbf16, #tpu.memory_space<vmem>>, vector<12x8xbf16>
    %cst = arith.constant dense<0.000000e+00> : vector<18x8xf32>
    %7 = tpu.matmul %5, %6, %cst {dimension_numbers = #tpu.dot_dimension_numbers<[1], [0], [0], [1], [0, 0, 1, 1], [], []>} : vector<18x12xbf16>, vector<12x8xbf16>, vector<18x8xf32> -> vector<18x8xf32>
    %c0_5 = arith.constant 0 : index
    %c0_6 = arith.constant 0 : index
    %8 = vector.load %arg4[%c0_5, %c0_6] : memref<1x8xf32, #tpu.memory_space<vmem>>, vector<1x8xf32>
    %9 = vector.broadcast %8 : vector<1x8xf32> to vector<18x8xf32>
    %10 = arith.addf %7, %9 : vector<18x8xf32>
    %cst_7 = arith.constant dense<0.000000e+00> : vector<18xf32>
    %11 = vector.multi_reduction <add>, %10, %cst_7 [1] : vector<18x8xf32> to vector<18xf32>
    %12 = vector.shape_cast %11 : vector<18xf32> to vector<18x1xf32>
    %cst_8 = arith.constant 8.000000e+00 : f32
    %13 = vector.broadcast %cst_8 : f32 to vector<18x1xf32>
    %14 = arith.divf %12, %13 : vector<18x1xf32>
    %15 = vector.broadcast %14 : vector<18x1xf32> to vector<18x8xf32>
    %16 = arith.subf %10, %15 : vector<18x8xf32>
    %17 = arith.mulf %16, %16 : vector<18x8xf32>
    %cst_9 = arith.constant dense<0.000000e+00> : vector<18xf32>
    %18 = vector.multi_reduction <add>, %17, %cst_9 [1] : vector<18x8xf32> to vector<18xf32>
    %19 = vector.shape_cast %18 : vector<18xf32> to vector<18x1xf32>
    %cst_10 = arith.constant 8.000000e+00 : f32
    %20 = vector.broadcast %cst_10 : f32 to vector<18x1xf32>
    %21 = arith.divf %19, %20 : vector<18x1xf32>
    %22 = vector.broadcast %14 : vector<18x1xf32> to vector<18x8xf32>
    %23 = arith.subf %10, %22 : vector<18x8xf32>
    %cst_11 = arith.constant 9.99999974E-6 : f32
    %24 = vector.broadcast %cst_11 : f32 to vector<18x1xf32>
    %25 = arith.addf %21, %24 : vector<18x1xf32>
    %26 = math.rsqrt %25 : vector<18x1xf32>
    %27 = vector.broadcast %26 : vector<18x1xf32> to vector<18x8xf32>
    %28 = arith.mulf %23, %27 : vector<18x8xf32>
    %c0_12 = arith.constant 0 : index
    %c0_13 = arith.constant 0 : index
    %29 = vector.load %arg5[%c0_12, %c0_13] : memref<1x8xf32, #tpu.memory_space<vmem>>, vector<1x8xf32>
    %30 = vector.broadcast %29 : vector<1x8xf32> to vector<18x8xf32>
    %31 = arith.mulf %28, %30 : vector<18x8xf32>
    %c0_14 = arith.constant 0 : index
    %c0_15 = arith.constant 0 : index
    %32 = vector.load %arg6[%c0_14, %c0_15] : memref<1x8xf32, #tpu.memory_space<vmem>>, vector<1x8xf32>
    %33 = vector.broadcast %32 : vector<1x8xf32> to vector<18x8xf32>
    %34 = arith.addf %31, %33 : vector<18x8xf32>
    %cst_16 = arith.constant 0.000000e+00 : f32
    %35 = vector.broadcast %cst_16 : f32 to vector<18x8xf32>
    %36 = arith.maximumf %34, %35 : vector<18x8xf32>
    %c16_i32 = arith.constant 16 : i32
    %37 = arith.muli %arg1, %c16_i32 : i32
    %c1_i32 = arith.constant 1 : i32
    %38 = arith.subi %37, %c1_i32 : i32
    %39 = tpu.iota {dimensions = array<i32: 0>} : vector<18x1xi32>
    %40 = vector.broadcast %38 : i32 to vector<18x1xi32>
    %41 = arith.addi %40, %39 : vector<18x1xi32>
    %c0_i32 = arith.constant 0 : i32
    %42 = vector.broadcast %c0_i32 : i32 to vector<18x1xi32>
    %43 = arith.cmpi sge, %41, %42 : vector<18x1xi32>
    %c16_i32_17 = arith.constant 16 : i32
    %44 = vector.broadcast %c16_i32_17 : i32 to vector<18x1xi32>
    %45 = arith.cmpi slt, %41, %44 : vector<18x1xi32>
    %46 = arith.andi %43, %45 : vector<18x1xi1>
    %cst_18 = arith.constant 0.000000e+00 : f32
    %47 = vector.shape_cast %46 : vector<18x1xi1> to vector<18x1xi1>
    %48 = vector.broadcast %47 : vector<18x1xi1> to vector<18x8xi1>
    %49 = vector.broadcast %cst_18 : f32 to vector<18x8xf32>
    %50 = arith.select %48, %36, %49 : vector<18x8xi1>, vector<18x8xf32>
    %51 = arith.truncf %50 : vector<18x8xf32> to vector<18x8xbf16>
    %52 = vector.extract_strided_slice %51 {offsets = [0, 0], sizes = [16, 8], strides = [1, 1]} : vector<18x8xbf16> to vector<16x8xbf16>
    %53 = vector.extract_strided_slice %51 {offsets = [1, 0], sizes = [16, 8], strides = [1, 1]} : vector<18x8xbf16> to vector<16x8xbf16>
    %54 = vector.extract_strided_slice %51 {offsets = [2, 0], sizes = [16, 8], strides = [1, 1]} : vector<18x8xbf16> to vector<16x8xbf16>
    %55 = tpu.concatenate %52, %53, %54 in 1 : vector<16x8xbf16>, vector<16x8xbf16>, vector<16x8xbf16> -> vector<16x24xbf16>
    %c0_19 = arith.constant 0 : index
    %c0_20 = arith.constant 0 : index
    %56 = vector.load %arg7[%c0_19, %c0_20] : memref<24x8xbf16, #tpu.memory_space<vmem>>, vector<24x8xbf16>
    %cst_21 = arith.constant dense<0.000000e+00> : vector<16x8xf32>
    %57 = tpu.matmul %55, %56, %cst_21 {dimension_numbers = #tpu.dot_dimension_numbers<[1], [0], [0], [1], [0, 0, 1, 1], [], []>} : vector<16x24xbf16>, vector<24x8xbf16>, vector<16x8xf32> -> vector<16x8xf32>
    %c0_22 = arith.constant 0 : index
    %c0_23 = arith.constant 0 : index
    %58 = vector.load %arg8[%c0_22, %c0_23] : memref<1x8xf32, #tpu.memory_space<vmem>>, vector<1x8xf32>
    %59 = vector.broadcast %58 : vector<1x8xf32> to vector<16x8xf32>
    %60 = arith.addf %57, %59 : vector<16x8xf32>
    %61 = vector.extract_strided_slice %1 {offsets = [2, 0], sizes = [16, 4], strides = [1, 1]} : vector<24x4xbf16> to vector<16x4xbf16>
    %c0_24 = arith.constant 0 : index
    %c0_25 = arith.constant 0 : index
    %62 = vector.load %arg9[%c0_24, %c0_25] : memref<4x8xbf16, #tpu.memory_space<vmem>>, vector<4x8xbf16>
    %cst_26 = arith.constant dense<0.000000e+00> : vector<16x8xf32>
    %63 = tpu.matmul %61, %62, %cst_26 {dimension_numbers = #tpu.dot_dimension_numbers<[1], [0], [0], [1], [0, 0, 1, 1], [], []>} : vector<16x4xbf16>, vector<4x8xbf16>, vector<16x8xf32> -> vector<16x8xf32>
    %c0_27 = arith.constant 0 : index
    %c0_28 = arith.constant 0 : index
    %64 = vector.load %arg10[%c0_27, %c0_28] : memref<1x8xf32, #tpu.memory_space<vmem>>, vector<1x8xf32>
    %65 = vector.broadcast %64 : vector<1x8xf32> to vector<16x8xf32>
    %66 = arith.addf %63, %65 : vector<16x8xf32>
    %67 = arith.addf %60, %66 : vector<16x8xf32>
    %cst_29 = arith.constant 0.000000e+00 : f32
    %68 = vector.broadcast %cst_29 : f32 to vector<16x8xf32>
    %69 = arith.maximumf %67, %68 : vector<16x8xf32>
    %70 = tpu.transpose %69, [1, 0] : vector<16x8xf32> -> vector<8x16xf32>
    %c0_30 = arith.constant 0 : index
    %c0_31 = arith.constant 0 : index
    %c0_32 = arith.constant 0 : index
    %71 = vector.load %arg11[%c0_30, %c0_31, %c0_32] : memref<1x8x16xf32, #tpu.memory_space<vmem>>, vector<1x8x16xf32>
    %72 = vector.shape_cast %71 : vector<1x8x16xf32> to vector<8x16xf32>
    %73 = vector.shape_cast %70 : vector<8x16xf32> to vector<1x8x16xf32>
    tpu.vector_store %arg11[%c0_30, %c0_31, %c0_32], %73 {strides = array<i32>} : memref<1x8x16xf32, #tpu.memory_space<vmem>>, vector<1x8x16xf32>,
    return
  }
  func.func @transform_0(%arg0: i32, %arg1: i32) -> (i32, i32, i32, i32) {
    %c0_i32 = arith.constant 0 : i32
    %c0_i32_0 = arith.constant 0 : i32
    %c0_i32_1 = arith.constant 0 : i32
    return %arg0, %arg1, %c0_i32, %c0_i32_0 : i32, i32, i32, i32
  }
  func.func @transform_1(%arg0: i32, %arg1: i32) -> (i32, i32) {
    %c0_i32 = arith.constant 0 : i32
    %c0_i32_0 = arith.constant 0 : i32
    %c0_i32_1 = arith.constant 0 : i32
    return %c0_i32, %c0_i32_0 : i32, i32
  }
  func.func @transform_2(%arg0: i32, %arg1: i32) -> (i32, i32) {
    %c0_i32 = arith.constant 0 : i32
    %c0_i32_0 = arith.constant 0 : i32
    %c0_i32_1 = arith.constant 0 : i32
    return %c0_i32, %c0_i32_0 : i32, i32
  }
  func.func @transform_3(%arg0: i32, %arg1: i32) -> (i32, i32) {
    %c0_i32 = arith.constant 0 : i32
    %c0_i32_0 = arith.constant 0 : i32
    %c0_i32_1 = arith.constant 0 : i32
    return %c0_i32, %c0_i32_0 : i32, i32
  }
  func.func @transform_4(%arg0: i32, %arg1: i32) -> (i32, i32) {
    %c0_i32 = arith.constant 0 : i32
    %c0_i32_0 = arith.constant 0 : i32
    %c0_i32_1 = arith.constant 0 : i32
    return %c0_i32, %c0_i32_0 : i32, i32
  }
  func.func @transform_5(%arg0: i32, %arg1: i32) -> (i32, i32) {
    %c0_i32 = arith.constant 0 : i32
    %c0_i32_0 = arith.constant 0 : i32
    %c0_i32_1 = arith.constant 0 : i32
    return %c0_i32, %c0_i32_0 : i32, i32
  }
  func.func @transform_6(%arg0: i32, %arg1: i32) -> (i32, i32) {
    %c0_i32 = arith.constant 0 : i32
    %c0_i32_0 = arith.constant 0 : i32
    %c0_i32_1 = arith.constant 0 : i32
    return %c0_i32, %c0_i32_0 : i32, i32
  }
  func.func @transform_7(%arg0: i32, %arg1: i32) -> (i32, i32) {
    %c0_i32 = arith.constant 0 : i32
    %c0_i32_0 = arith.constant 0 : i32
    %c0_i32_1 = arith.constant 0 : i32
    return %c0_i32, %c0_i32_0 : i32, i32
  }
  func.func @transform_8(%arg0: i32, %arg1: i32) -> (i32, i32) {
    %c0_i32 = arith.constant 0 : i32
    %c0_i32_0 = arith.constant 0 : i32
    %c0_i32_1 = arith.constant 0 : i32
    return %c0_i32, %c0_i32_0 : i32, i32
  }
  func.func @transform_9(%arg0: i32, %arg1: i32) -> (i32, i32, i32) {
    %c0_i32 = arith.constant 0 : i32
    %c0_i32_0 = arith.constant 0 : i32
    return %arg0, %c0_i32, %arg1 : i32, i32, i32
  }
}

</mosaic_0001>

<bundles_post_ra>
// kernel: tpu_custom_call.1
= control target key start
LH: loop header
LB: loop body
LE: loop exit
PB: predicated region body
PF: predicated region fallthrough
CT: control target
= control target key end

     0   :  { %14 = vsyncpa [#allocation3], 0  ;;  %s1284_s0 = inlined_call_operand.vmem [shape: bf16[2,1,24,4], index: 0, kind: input, shape index: {}]   ;;  %s1285_s1 = inlined_call_operand.vmem [shape: bf16[12,8], index: 1, kind: input, shape index: {}]   ;;  %s1286_s2 = inlined_call_operand.vmem [shape: f32[1,8], index: 2, kind: input, shape index: {}]   ;;  %s1287_s3 = inlined_call_operand.vmem [shape: f32[1,8], index: 3, kind: input, shape index: {}]   ;;  %s1288_s4 = inlined_call_operand.vmem [shape: f32[1,8], index: 4, kind: input, shape index: {}]   ;;  %s1289_s5 = inlined_call_operand.vmem [shape: bf16[24,8], index: 5, kind: input, shape index: {}]   ;;  %s1290_s6 = inlined_call_operand.vmem [shape: f32[1,8], index: 6, kind: input, shape index: {}]   ;;  %s1291_s7 = inlined_call_operand.vmem [shape: bf16[4,8], index: 7, kind: input, shape index: {}]   ;;  %s1292_s8 = inlined_call_operand.vmem [shape: f32[1,8], index: 8, kind: input, shape index: {}]   ;;  %s1293_s9 = inlined_call_operand.hbm [shape: f32[2,8,16], index: 9, kind: output, shape index: {}]  }
   0x1   :  { %16 = vsyncpa [#allocation3 + $0x1], 0  ;;  %s1120_s30 = smov 0   ;;  %s1122_s10 = smov 0  }
   0x2   :  { %s1124_s11 = smov 0   ;;  %s1126_s12 = smov 0  }
   0x3   :  { %s1128_s13 = smov 0   ;;  %s1130_s14 = smov 0  }
   0x4 LB: > { %s852_s15 = sadd.s32 4294967295, %s1062_s14   ;;  %s853_s16 = sadd.s32 4294967294, %s1062_s14   ;;  %s1062_s14 = sphi %s1130_s14, %s22_s14   ;;  %s1058_s13 = sphi %s1128_s13, %s1300_s13   ;;  %s1054_s12 = sphi %s1126_s12, %s1299_s12   ;;  %s1050_s11 = sphi %s1124_s11, %s1298_s11   ;;  %s1046_s10 = sphi %s1122_s10, %s1297_s10   ;;  %s1042_s30 = sphi %s1120_s30, %s1296_s30  }
   0x5   : > { %s34_s17 = sadd.s32 1, %s1058_s13  ;;  %s239_s18 = sadd.s32 1, %s1050_s11 }
   0x6   : > { %p36_p0 = scmp.ge.s32.totalorder %s34_s17, 2  ;;  %p249_p1 = scmp.ne.s32.totalorder %s1050_s11, %s1046_s10 }
   0x7   : > { %p250_p2 = scmp.eq.s32.totalorder %s852_s15, 1  ;;  %p255_p3 = scmp.ne.s32.totalorder %s1046_s10, %s1042_s30 }
   0x8   : > { %s1302_s17 = smov (%p36_p0, %s34_s17), 0  ;;  %p256_p5 = scmp.eq.s32.totalorder %s853_s16, 1 }
   0x9   : > { %p1160_p4 = por %p250_p2, %p249_p1  ;;  %s234_s20 = ssub.s32 %s1058_s13, %s1302_s17 }
   0xa   : > { %p856_p6 = scmp.ge.s32.totalorder %s1062_s14, 1  ;;  %p237_p7 = scmp.eq.s32.totalorder %s234_s20, 0 }
   0xb   : > { %p1167_p8 = por %p256_p5, %p255_p3  ;;  %p310_p9 = scmp.lt.s32.totalorder %s1062_s14, 3 }
   0xc   : > { %s1173_s22 = scalar_select %p237_p7, %s1050_s11, %s239_s18  }
   0xd   : > { %p311_p10 = pnand %p856_p6, %p310_p9 }
   0xe   : > { %p350_p11 = scmp.lt.s32.totalorder (!%p311_p10), %s1054_s12, 1  ;;  %v975_v0 = vld [vmem:[%s1285_s1] sm:$0x3f] (!%p311_p10)   ;;  %vm428_vm0 = vcmask (!%p311_p10), 1045504   ;;  %vm391_vm1 = vcmask (!%p311_p10), 1046528   ;;  %s1064_s15 = smov (!%p311_p10), 8   ;;  %v546_v61 = vlaneseq (!%p311_p10) }
   0xf   : > { %314 = sbr.rel (%p311_p10) target bundleno = 1178 (0x49a), region = 56  ;;  %911 = vmatprep.subr.msk.bf16.mxu0 (!%p311_p10), %vm428_vm0, %v975_v0  ;;  %v430_v1 = vsel (!%p311_p10), %vm428_vm0, %v975_v0, 0  ;;  %vm371_vm2 = vsmask.f32 (!%p311_p10), 7424  ;;  %s1065_s16 = smov (!%p311_p10), 4   ;;  %vm399_vm3 = vcmask (!%p311_p10), 31744  }
  0x10   : > { %886 = vmatpush3.bf16.msra.mxu0 (!%p311_p10), %v430_v1  ;;  %vm404_vm4 = vcmask (!%p311_p10), 64512   ;;  %vm423_vm5 = vcmask (!%p311_p10), 97280   ;;  %v861_v24 = vld [vmem:[%s1286_s2] ss:$0 sm:$0xff] (!%p311_p10)  ;;  %vm486_vm6 = vcmask (!%p311_p10), 58368   ;;  %v1066_v51 = vmov (!%p311_p10), 0.0  }
  0x11   : > { %v976_v50 = vld [vmem:[%s1289_s5] sm:$0xff] (!%p311_p10)   ;;  %891 = vmatprep.subr.bf16.mxu0 (!%p311_p10), %v1066_v51  ;;  %899 = vmatprep.subr.bf16.mxu1 (!%p311_p10), %v1066_v51  ;;  %v547_v62 = vshrl.u32 (!%p311_p10), %v546_v61, 7  ;;  %vm622_vm7 = vcmask (!%p311_p10), 1043456   ;;  %vm678_vm9 = vcmask (!%p311_p10), 1041408   ;;  %vm1067_vm10 = vmmov (!%p311_p10), 0   ;;  %s347_s27 = sand.u32 (!%p311_p10), 1, %s1046_s10  }
  0x12   : > { %v865_v0 = vld [vmem:[%s1287_s3] ss:$0 sm:$0xff] (!%p311_p10)  ;;  %901 = vmatprep.mubr.msk.bf16.mxu1 (!%p311_p10), %vm1067_vm10, %v1066_v51  ;;  %vm597_vm12 = vcmask (!%p311_p10), 130048   ;;  %vm619_vm13 = vcmask (!%p311_p10), 195584   ;;  %s857_s28 = sshll.u32 (!%p311_p10), %s347_s27, 3  ;;  %s761_s25 = scalar_lea.sflag (!%p311_p10), [#allocation3], %s347_s27 }
  0x16   : > { %s351_s23 = scalar_select %p350_p11, %s1054_s12, 1 }
  0x18   : > { %s912_s24 = smul.u32 12, %s351_s23  ;;  %s1068_s23 = smov 16  }
  0x1a   : > { %s358_s29 = scalar_lea.vmem %s1284_s0, %s912_s24 }
  0x1b   : > { %v973_v2 = vld [vmem:[%s358_s29] sm:$0xff]   ;;  %v974_v3 = vld [vmem:[%s358_s29 + $0x8] ss:$0 sps:$4 sm:$0xff]   ;;  %s874_s29 = sshll.u32 %s1054_s12, 7  ;;  %s1069_s12 = smov [#allocation2]  }
  0x1c   : > { %v373_v4 = vshrl.u32 %v973_v2, 16  ;;  %v375_v5 = vshll.u32 %v973_v2, 16  ;;  %v380_v6 = vshll.u32 %v974_v3, 16  ;;  %v392_v7 = vrot.slane %v973_v2, 1  ;;  %s1236_s24 = scalar_lea.hbm %s1293_s9, %s874_s29  ;;  %s988_s26 = sshll.u32 %s1069_s12, 4  ;;  %s989_s26 = int_to_ptr.vmem [resolvable:$false] %s988_s26 }
  0x1d   : > { %v393_v8 = vrot.slane %v974_v3, 1  ;;  %v384_v12 = vshrl.u32 %v974_v3, 16 }
  0x1e   : > { %v377_v9 = vrot.slane %v375_v5, 1  ;;  %v382_v10 = vrot.slane %v380_v6, 1  ;;  %v551_v5 = vadd.s32 4294967295, %v547_v62 }
  0x1f   : > { %v1184_v11 = vsel %vm391_vm1, %v392_v7, %v393_v8 }
  0x20   : > { %v378_v13 = vor.u32 %v377_v9, %v373_v4  ;;  %395 = vrot.lane.b32.xlu1 %v1184_v11, %s1064_s15  ;;  %v386_v15 = vor.u32 %v384_v12, %v382_v10  ;;  %v549_v4 = vadd.s32 16, %v547_v62  ;;  %v977_v9 = vld [vmem:[%s1289_s5 + $0x8] ss:$0 sps:$4 sm:$0xff]   ;;  %vm554_vm8 = vcmp.ge.s32.totalorder %v551_v5, 0 }
  0x22   : > { %v383_v14 = vsel %vm371_vm2, %v378_v13, %v382_v10 }
  0x23   : > { %387 = vrot.lane.b32.xlu0 %v383_v14, %s1065_s16  ;;  %v553_v14 = vadd.s32 4294967295, %v549_v4 }
  0x24   : > { %397 = vrot.lane.b32.xlu1 %v393_v8, %s1064_s15 }
  0x25   : > { %vm559_vm11 = vcmp.lt.s32.totalorder %v553_v14, 16 }
  0x27   : > { %389 = vrot.lane.b32.xlu0 %v386_v15, %s1065_s16  ;;  %v624_v15 = vsel %vm622_vm7, %v977_v9, 0  ;;  %s349_s16 = scalar_lea.vmem [#allocation2], %s857_s28  ;;  %s990_s28 = scalar_lea.vmem %s989_s26, 256 }
  0x28   : > { %s775_s18 = sshll.u32 %s349_s16, 4  ;;  %s1238_s18 = int_to_ptr.vmem [resolvable:$true] %s775_s18 }
  0x29   : > { %p991_p1 = scmp.lt.s32.totalorder %s1238_s18, %s989_s26 }
  0x92   : > { %v396_v16 = vpop.permute.xlu1 %395 }
  0x95   : > { %v388_v17 = vpop.permute.xlu0 %387 }
  0x96   : > { %v401_v18 = vsel %vm399_vm3, %v973_v2, %v388_v17  ;;  %v398_v20 = vpop.permute.xlu1 %397 }
  0x97   : > { %v406_v19 = vsel %vm404_vm4, %v401_v18, %v396_v16  ;;  %v667_v16 = vld [vmem:[%s1291_s7] sm:$0x3] }
  0x98   : > { %887 = vmatprep.mubr.msk.bf16.mxu0 %vm423_vm5, %v406_v19 }
  0x99   : > { %v390_v21 = vpop.permute.xlu0 %389 }
  0x9a   : > { %v403_v22 = vsel %vm399_vm3, %v974_v3, %v390_v21  ;;  %v866_v3 = vld [vmem:[%s1288_s4] ss:$0 sm:$0xff] }
  0x9b   : > { %v408_v23 = vsel %vm404_vm4, %v403_v22, %v398_v20  ;;  %v680_v20 = vsel %vm678_vm9, %v667_v16, 0 }
  0x9c   : > { %888 = vmatmul.mubr.msk.bf16.vlgmr.msra.gmra.mrb[0].mxu0 %vm423_vm5, %v408_v23  ;;  %900 = vmatpush3.bf16.msra.mxu1 %v680_v20 }
  0x9d   : > { %892 = vmatpush3.bf16.msra.mxu0 %v976_v50  ;;  %895 = vmatprep.mubr.msk.bf16.mxu0 %vm1067_vm10, %v1066_v51 }
  0x9e   : > { %893 = vmatprep.subr.bf16.mxu0 %v1066_v51 }
  0x9f   : > { %902 = vmatmul.mubr.msk.bf16.vlgmr.msra.gmra.mrb[0].mxu1 %vm399_vm3, %v1184_v11 }
  0xa1   : > { %894 = vmatpush3.bf16.msra.mxu0 %v624_v15 }
 0x16f   : > { %v889_v25 = vpop.f32.mrb[0].mxu0 }
 0x170   : > { %v466_v26 = vpop.f32.mrb[1].mxu0  ;;  %v475_v30 = vadd.f32 %v889_v25, %v861_v24 }
 0x171   : > { %v467_v27 = vadd.f32 %v861_v24, %v466_v26  ;;  %v890_v28 = vpop.f32.mrb[2].mxu0 }
 0x172   : > { %v469_v29 = vpop.f32.mrb[3].mxu0  ;;  %v487_v34 = vsel %vm486_vm6, %v475_v30, 0.0 }
 0x173   : > { %v470_v31 = vadd.f32 %v861_v24, %v469_v29  ;;  %v480_v32 = vsel %vm404_vm4, %v467_v27, 0.0 }
 0x174   : > { %481 = vadd.xlane.f32.xlu0 %v480_v32 }
 0x175   : > { %v483_v33 = vsel %vm404_vm4, %v470_v31, 0.0 }
 0x176   : > { %484 = vadd.xlane.f32.xlu1 %v483_v33 }
 0x178   : > { %488 = vadd.xlane.f32.xlu0 %v487_v34 }
 0x201   : > { %v482_v35 = vpop.xlane.xlu0 %481 }
 0x202   : > { %v491_v36 = vmul.f32 0.125, %v482_v35 }
 0x203   : > { %v485_v37 = vpop.xlane.xlu1 %484 }
 0x204   : > { %v494_v38 = vsub.f32 %v467_v27, %v491_v36  ;;  %v492_v39 = vmul.f32 0.125, %v485_v37 }
 0x205   : > { %v489_v40 = vpop.xlane.xlu0 %488 }
 0x206   : > { %v495_v41 = vsub.f32 %v470_v31, %v492_v39  ;;  %v493_v42 = vmul.f32 0.125, %v489_v40  ;;  %v497_v43 = vmul.f32 %v494_v38, %v494_v38 }
 0x208   : > { %v496_v44 = vsub.f32 %v475_v30, %v493_v42  ;;  %v500_v45 = vsel %vm404_vm4, %v497_v43, 0.0  ;;  %v498_v46 = vmul.f32 %v495_v41, %v495_v41 }
 0x209   : > { %501 = vadd.xlane.f32.xlu0 %v500_v45  ;;  %v867_v45 = vld [vmem:[%s1290_s6] ss:$0 sm:$0xff] }
 0x20a   : > { %v503_v47 = vsel %vm404_vm4, %v498_v46, 0.0  ;;  %v499_v48 = vmul.f32 %v496_v44, %v496_v44 }
 0x20b   : > { %504 = vadd.xlane.f32.xlu1 %v503_v47  ;;  %v871_v47 = vld [vmem:[%s1292_s8] ss:$0 sm:$0xff] }
 0x20c   : > { %v506_v49 = vsel %vm486_vm6, %v499_v48, 0.0 }
 0x20d   : > { %507 = vadd.xlane.f32.xlu0 %v506_v49 }
 0x296   : > { %v502_v52 = vpop.xlane.xlu0 %501 }
 0x297   : > { %v509_v53 = vmul.f32 0.125, %v502_v52 }
 0x298   : > { %v505_v54 = vpop.xlane.xlu1 %504 }
 0x299   : > { %v512_v55 = vadd.f32 1e-05, %v509_v53  ;;  %v510_v56 = vmul.f32 0.125, %v505_v54 }
 0x29a   : > { %v508_v57 = vpop.xlane.xlu0 %507 }
 0x29b   : > { %978 = vrsqrt.f32 %v512_v55  ;;  %v513_v58 = vadd.f32 1e-05, %v510_v56  ;;  %v511_v59 = vmul.f32 0.125, %v508_v57 }
 0x29d   : > { %980 = vrsqrt.f32 %v513_v58  ;;  %v514_v60 = vadd.f32 1e-05, %v511_v59 }
 0x29f   : > { %982 = vrsqrt.f32 %v514_v60 }
 0x2a5   : > { %v979_v63 = vpop.eup %978 }
 0x2a6   : > { %v518_v1 = vmul.f32 %v979_v63, %v494_v38 }
 0x2a7   : > { %v981_v2 = vpop.eup %980 }
 0x2a8   : > { %v528_v6 = vmul.f32 %v865_v0, %v518_v1  ;;  %v519_v7 = vmul.f32 %v981_v2, %v495_v41  ;;  %v716_v41 = vpop.f32.mrb[0].mxu1 }
 0x2a9   : > { %v983_v8 = vpop.eup %982  ;;  %v903_v42 = vpop.f32.mrb[1].mxu1 }
 0x2aa   : > { %v529_v10 = vmul.f32 %v865_v0, %v519_v7  ;;  %v520_v12 = vmul.f32 %v983_v8, %v496_v44  ;;  %v538_v13 = vadd.f32 %v866_v3, %v528_v6  ;;  %v719_v43 = vpop.f32.mrb[2].mxu1 }
 0x2ab   : > { %v904_v44 = vpop.f32.mrb[3].mxu1 }
 0x2ac   : > { %v530_v17 = vmul.f32 %v865_v0, %v520_v12  ;;  %v539_v18 = vadd.f32 %v866_v3, %v529_v10  ;;  %v541_v19 = vmax.f32 %v538_v13, 0.0 }
 0x2ae   : > { %v540_v21 = vadd.f32 %v866_v3, %v530_v17  ;;  %v542_v22 = vmax.f32 %v539_v18, 0.0  ;;  %v569_v23 = vsel %vm554_vm8, %v541_v19, 0.0 }
 0x2b0   : > { %v543_v24 = vmax.f32 %v540_v21, 0.0  ;;  %v572_v25 = vpack.c.bf16 %v542_v22, %v569_v23 }
 0x2b2   : > { %v571_v26 = vsel %vm559_vm11, %v543_v24, 0.0  ;;  %v577_v27 = vshll.u32 %v572_v25, 16  ;;  %v575_v29 = vshrl.u32 %v572_v25, 16  ;;  %v590_v31 = vrot.slane %v572_v25, 1 }
 0x2b3   : > { %v573_v28 = vpack.c.bf16 %v571_v26, %v571_v26 }
 0x2b4   : > { %v579_v30 = vrot.slane %v577_v27, 1 }
 0x2b5   : > { %v591_v32 = vrot.slane %v573_v28, 1  ;;  %v582_v33 = vshll.u32 %v573_v28, 16 }
 0x2b6   : > { %v580_v34 = vor.u32 %v579_v30, %v575_v29 }
 0x2b7   : > { %v592_v35 = vsel %vm391_vm1, %v590_v31, %v591_v32  ;;  %v584_v36 = vrot.slane %v582_v33, 1 }
 0x2b8   : > { %593 = vrot.lane.b32.xlu0 %v592_v35, %s1068_s23 }
 0x2b9   : > { %v585_v37 = vsel %vm371_vm2, %v580_v34, %v584_v36 }
 0x2ba   : > { %586 = vrot.lane.b32.xlu1 %v585_v37, %s1064_s15  ;;  %s984_s15 = scalar_lea.vmem %s1238_s18, 128 }
 0x2bb   : > { %p985_p12 = scmp.ne.s32.totalorder %s1238_s18, %s984_s15  ;;  %p992_p2 = scmp.lt.s32.totalorder %s990_s28, %s984_s15 }
 0x2bd   : > { %p986_p13 = pnand %p985_p12, %p1160_p4  ;;  %p993_p3 = por %p992_p2, %p991_p1 }
 0x2bf   : > { %p987_p0 = pneg %p986_p13 }
 0x2c1   : > { %p994_p5 = pnand %p993_p3, %p987_p0 }
 0x32a   : > { %v594_v38 = vpop.permute.xlu0 %593 }
 0x32c   : > { %v587_v11 = vpop.permute.xlu1 %586 }
 0x32d   : > { %v596_v39 = vsel %vm404_vm4, %v572_v25, %v587_v11 }
 0x32e   : > { %v599_v40 = vsel %vm597_vm12, %v596_v39, %v594_v38 }
 0x32f   : > { %896 = vmatmul.mubr.msk.bf16.vlgmr.msra.gmra.mrb[4].mxu0 %vm619_vm13, %v599_v40 }
 0x402   : > { %v660_v46 = vpop.f32.mrb[4].mxu0 }
 0x403   : > { %v661_v48 = vadd.f32 %v867_v45, %v660_v46  ;;  %v897_v49 = vpop.f32.mrb[5].mxu0 }
 0x404   : > { %v663_v50 = vpop.f32.mrb[6].mxu0 }
 0x405   : > { %v906_v51 = vadd.f32 %v871_v47, %v661_v48  ;;  %v664_v52 = vadd.f32 %v867_v45, %v663_v50  ;;  %v898_v53 = vpop.f32.mrb[7].mxu0 }
 0x407   : > { %v907_v54 = vadd.f32 %v906_v51, %v716_v41  ;;  %v909_v55 = vadd.f32 %v871_v47, %v664_v52 }
 0x409   : > { %v725_v56 = vmax.f32 %v907_v54, 0.0  ;;  %v910_v57 = vadd.f32 %v909_v55, %v719_v43 }
 0x40b   : > { %727 = vxpose.xlu1.b32.start [1/2] (short) (narrow) %v725_v56, 8  ;;  %v726_v58 = vmax.f32 %v910_v57, 0.0 }
 0x40f   : > { %728 = vxpose.xlu1.b32.end [2/2] (short) (narrow) %v726_v58, 8 }
 0x48b   : > { %v743_v59 = vpop.trf.xlu1 }
 0x48c   : > { %759 = vst.msk [vmem:[%s349_s16] sm:$0xff] %vm597_vm12, %v743_v59 }
 0x48d   : > { %997 = shalt.err (!%p994_p5)
}
 0x48e   : > { %s998_s27 = scalar_lea.hbm %s1236_s24, 128  ;;  %s1002_s20 = scalar_lea.hbm %s1293_s9, 256 }
 0x48f   : > { %p999_p6 = scmp.ne.s32.totalorder %s1236_s24, %s998_s27  ;;  %p1003_p10 = scmp.lt.u32.totalorder %s1236_s24, %s1293_s9 }
 0x490   : > { %p1004_p11 = scmp.lt.u32.totalorder %s1002_s20, %s998_s27  ;;  %p1006_p13 = scmp.lt.u32.totalorder %s998_s27, %s1236_s24 }
 0x491   : > { %p1000_p7 = pnand %p999_p6, %p1160_p4 }
 0x492   : > { %p1005_p12 = por %p1004_p11, %p1003_p10 }
 0x493   : > { %p1001_p9 = pneg %p1000_p7 }
 0x494   : > { %p1007_p0 = por %p1006_p13, %p1005_p12 }
 0x496   : > { %p1008_p1 = pnand %p1007_p0, %p1001_p9 }
 0x498   : > { %1011 = shalt.err (!%p1008_p1)
}
 0x499   : > { %913 = dma.vmem_to_hbm [thread:$0]  (%p1160_p4), %s1238_s18, 128, %s1236_s24, %s761_s25  }
 0x49a PF: > { %p919_p2 = scmp.ge.s32.totalorder %s1062_s14, 2  ;;  %s787_s15 = sand.u32 1, %s1042_s30  }
 0x49b   : > { %s788_s26 = scalar_lea.sflag [#allocation3], %s787_s15 }
 0x49c   : > { %p916_p3 = pnand %p919_p2, %p1167_p8 }
 0x49e   : > { %1037 = dma.done.wait (!%p916_p3), %s788_s26, 128  }
 0x49f   : > { %1039 = vsyncadd (!%p916_p3), %s788_s26, 4294967168  ;;  %s22_s14 = sadd.s32 1, %s1062_s14   ;;  %s1296_s30 = smov %s1046_s10 }
 0x4a0   : > { %p19_p5 = scmp.ge.s32.totalorder %s22_s14, 4   ;;  %s1297_s10 = smov %s1050_s11 }
 0x4a1   : > { %s1298_s11 = smov %s1173_s22  ;;  %s1299_s12 = smov %s1058_s13 }
 0x4a2   : > { %s1300_s13 = smov %s1302_s17  ;;  %21 = sbr.rel (!%p19_p5) target bundleno = 4 (0x4), region = 91 }
 0x4a9   :  { %793 = vsyncpa [#allocation3], 1 }
 0x4aa   :  { %795 = vsyncpa [#allocation3 + $0x1], 1 }

</bundles_post_ra>
